<compile_context>
chip_gen: v7x
topology: tpu7x:2x2x1
jax: 0.10.0
libtpu: 0.0.40
codegen_flags: <defaults>
</compile_context>

<pallas_src>
import functools

import jax
import jax.numpy as jnp
from jax.experimental import pallas as pl
from jax.experimental.pallas import tpu as pltpu


def _round_up(x, m):
    return ((x + m - 1) // m) * m


# ------------------------------ fused kernel -------------------------------

def _textcnn_fused_kernel(x_ref, wconv_ref, bconv_ref, wfc_ref, bfc_ref,
                          o_ref, xp_ref, *,
                          kernel_sizes, num_filters, emb_dim):
    # x_ref:     (TB, S, E)         embeddings for this batch tile
    # wconv_ref: (k_max, E_pad, C)  packed conv weights, C = n_widths * F
    # bconv_ref: (1, C)             packed conv biases
    # wfc_ref:   (C, O_pad)         FC weight (output padded to lane width)
    # bfc_ref:   (1, O_pad)         FC bias
    # o_ref:     (1, TB, O_pad)     final sigmoid outputs for this tile
    # xp_ref:    (R, E_pad)         VMEM scratch: flat zero-padded embeddings
    TB, S, _ = x_ref.shape
    k_max = max(kernel_sizes)
    pad = k_max - 2
    L_pad = S + 2 * pad                  # padded length of one batch row
    M = TB * L_pad                       # all conv positions for this tile
    C = wconv_ref.shape[2]
    F = num_filters

    # Zero the scratch, then drop each batch row's embeddings into the middle
    # of its own L_pad-row block.  Everything outside the data (per-row head
    # and tail padding, lane padding E..E_pad, tail slack rows) stays zero,
    # so windows that stray past a block boundary only ever read zeros.
    xp_ref[...] = jnp.zeros_like(xp_ref)
    for t in range(TB):                  # TB is small and static
        r0 = t * L_pad + pad
        xp_ref[r0:r0 + S, :emb_dim] = x_ref[t]

    # All widths + all batch rows in k_max shifted matmuls:
    #   conv[r] = sum_j xp[r + j] @ w_packed[j],   r = t*L_pad + l.
    # Width k occupies tap offsets j = k_max-k .. k_max-1 of the packed
    # weight (other taps are zero), which makes shared position l equal to
    # PyTorch's per-width output position l.
    w_conv = wconv_ref[...]              # hoist weight load out of the loop
    acc = jnp.zeros((M, C), jnp.float32)
    for j in range(k_max):
        acc += jnp.dot(xp_ref[j:j + M, :], w_conv[j],
                       preferred_element_type=jnp.float32)
    conv = jnp.maximum(acc + bconv_ref[...], 0.0)          # bias + ReLU

    # Per-width validity: width k only has S + k - 3 real output positions;
    # extra positions (incl. cross-block rows) are forced to 0, which never
    # exceeds the true post-ReLU max.
    vlen = jnp.concatenate(
        [jnp.full((L_pad, F), S + k - 3, jnp.int32) for k in kernel_sizes],
        axis=1)                                            # (L_pad, C)
    valid = jax.lax.broadcasted_iota(jnp.int32, (L_pad, C), 0) < vlen

    # Global max-pool per batch row; lane order is already the width concat.
    feats = jnp.concatenate(
        [jnp.max(jnp.where(valid, conv[t * L_pad:(t + 1) * L_pad, :], 0.0),
                 axis=0, keepdims=True)
         for t in range(TB)], axis=0)                      # (TB, C)

    # FC + sigmoid, lane-dense store (O_pad multiple of 128).
    z = jnp.dot(feats.astype(wfc_ref.dtype), wfc_ref[...],
                preferred_element_type=jnp.float32) + bfc_ref[...]
    o_ref[0] = 1.0 / (1.0 + jnp.exp(-z))                   # exp on EUP


# ------------------------------ JAX wrapper --------------------------------

def textcnn_forward(token_ids, params, kernel_sizes, *,
                    batch_tile=8, mxu_dtype=jnp.float32):
    # TODO(synk): at production vocab/seq sizes, fold this gather into the
    # kernel (PrefetchScalarGridSpec + DMA row-gather) so the (B, S, E)
    # activations never round-trip HBM; at toy sizes it is cheap glue.
    emb = params["embed"][token_ids].astype(mxu_dtype)        # (B, S, E)
    B, S, E = emb.shape
    F = params["conv_b"][0].shape[0]
    n_w = len(kernel_sizes)
    C = n_w * F
    k_max = max(kernel_sizes)
    pad = k_max - 2
    L_pad = S + 2 * pad
    E_pad = _round_up(E, 128)      # lane-aligned contraction dim
    O = params["fc_w"].shape[1]
    O_pad = _round_up(O, 128)      # lane-dense output store; sliced below

    # Pack all conv-width weights into one (k_max, E_pad, C) operand.  Width
    # k occupies tap offsets [k_max-k, k_max); other taps / lane-pad rows are
    # zero, realizing PyTorch's per-width (k-2, 0) padding.  (In production
    # this packing would be precomputed once, not per call.)
    w_comb = jnp.zeros((k_max, E_pad, C), jnp.float32)
    for wi, k in enumerate(kernel_sizes):
        j0 = k_max - k
        w_comb = w_comb.at[j0:j0 + k, :E, wi * F:(wi + 1) * F].set(
            params["conv_w"][wi])
    b_comb = jnp.concatenate(
        [b.reshape(1, F) for b in params["conv_b"]], axis=1)  # (1, C)
    w_fc = jnp.zeros((C, O_pad), jnp.float32).at[:, :O].set(params["fc_w"])
    b_fc = jnp.zeros((1, O_pad), jnp.float32).at[:, :O].set(params["fc_b"])
    w_comb = w_comb.astype(mxu_dtype)
    w_fc = w_fc.astype(mxu_dtype)

    # Batch tiling: keep >= 2 parallel grid steps whenever B > 1 so both of
    # v7x's TensorCores get work; per-tile VMEM footprint is
    # ~tb*L_pad*E_pad*4 bytes, comfortably inside v7x's 64 MiB at realistic S.
    tb = min(batch_tile, B)
    if B > 1:
        tb = min(tb, pl.cdiv(B, 2))
    n_tiles = pl.cdiv(B, tb)
    B_pad = n_tiles * tb
    if B_pad != B:
        emb = jnp.concatenate(
            [emb, jnp.zeros((B_pad - B, S, E), emb.dtype)], axis=0)

    R = _round_up(tb * L_pad + k_max - 1, 8)   # flat padded-emb scratch rows

    kernel = functools.partial(
        _textcnn_fused_kernel,
        kernel_sizes=tuple(kernel_sizes), num_filters=F, emb_dim=E)

    out = pl.pallas_call(
        kernel,
        out_shape=jax.ShapeDtypeStruct((n_tiles, tb, O_pad), jnp.float32),
        grid=(n_tiles,),
        in_specs=[
            pl.BlockSpec((tb, S, E), lambda b: (b, 0, 0)),
            pl.BlockSpec((k_max, E_pad, C), lambda b: (0, 0, 0)),
            pl.BlockSpec((1, C), lambda b: (0, 0)),
            pl.BlockSpec((C, O_pad), lambda b: (0, 0)),
            pl.BlockSpec((1, O_pad), lambda b: (0, 0)),
        ],
        out_specs=pl.BlockSpec((1, tb, O_pad), lambda b: (b, 0, 0)),
        scratch_shapes=[
            pltpu.VMEM((R, E_pad), emb.dtype),   # flat zero-padded embeddings
        ],
        compiler_params=pltpu.CompilerParams(
            dimension_semantics=("parallel",)),
    )(emb, w_comb, b_comb, w_fc, b_fc)

    # TODO(synk): nn.Dropout is identity in eval mode; stochastic train-mode
    # dropout is not implemented.
    return out.reshape(B_pad, O_pad)[:B, :O]


# ---------------------------- pure-JAX reference ----------------------------

def textcnn_reference(token_ids, params, kernel_sizes):
    emb = params["embed"][token_ids]
    feats = []
    for i, k in enumerate(kernel_sizes):
        w, b = params["conv_w"][i], params["conv_b"][i]
        pad = k - 2
        xp = jnp.pad(emb, ((0, 0), (pad, pad), (0, 0)))
        L_out = xp.shape[1] - k + 1
        conv = sum(
            jnp.einsum("ble,ef->blf", xp[:, j:j + L_out, :], w[j])
            for j in range(k)
        ) + b
        feats.append(jnp.max(jax.nn.relu(conv), axis=1))
    x = jnp.concatenate(feats, axis=1)
    return jax.nn.sigmoid(x @ params["fc_w"] + params["fc_b"])


# ----------------------------------- main ------------------------------------

if __name__ == "__main__":
    # Small, module-consistent shapes.
    VOCAB, EMBED_DIM = 50, 32
    BATCH, SEQ = 2, 16
    NUM_FILTERS = 8
    KERNEL_SIZES = (3, 4, 5)
    OUTPUT_SIZE = 4

    key = jax.random.PRNGKey(0)
    k_emb, k_tok, k_fcw, k_fcb, *k_convs = jax.random.split(
        key, 4 + 2 * len(KERNEL_SIZES))

    params = {
        "embed": 0.1 * jax.random.normal(k_emb, (VOCAB, EMBED_DIM),
                                         jnp.float32),
        "conv_w": [],
        "conv_b": [],
        "fc_w": 0.1 * jax.random.normal(
            k_fcw, (len(KERNEL_SIZES) * NUM_FILTERS, OUTPUT_SIZE),
            jnp.float32),
        "fc_b": 0.01 * jax.random.normal(k_fcb, (OUTPUT_SIZE,), jnp.float32),
    }
    for i, k in enumerate(KERNEL_SIZES):
        kw, kb = k_convs[2 * i], k_convs[2 * i + 1]
        scale = 1.0 / jnp.sqrt(float(k * EMBED_DIM))
        params["conv_w"].append(
            scale * jax.random.normal(kw, (k, EMBED_DIM, NUM_FILTERS),
                                      jnp.float32))
        params["conv_b"].append(
            0.01 * jax.random.normal(kb, (NUM_FILTERS,), jnp.float32))

    token_ids = jax.random.randint(k_tok, (BATCH, SEQ), 0, VOCAB)

    out = textcnn_forward(token_ids, params, KERNEL_SIZES)
    out = jax.block_until_ready(out)

    ref = textcnn_reference(token_ids, params, KERNEL_SIZES)
    assert out.shape == (BATCH, OUTPUT_SIZE)
    assert jnp.allclose(out, ref, rtol=1e-5, atol=1e-5), "mismatch vs reference"

    print("KERNEL_OK")
</pallas_src>

<mosaic_0001>
module attributes {stable_mosaic.version = 11 : i64} {
  func.func @_textcnn_fused_kernel(%arg0: i32, %arg1: memref<1x16x32xf32, #tpu.memory_space<vmem>>, %arg2: memref<5x128x24xf32, #tpu.memory_space<vmem>>, %arg3: memref<1x24xf32, #tpu.memory_space<vmem>>, %arg4: memref<24x128xf32, #tpu.memory_space<vmem>>, %arg5: memref<1x128xf32, #tpu.memory_space<vmem>>, %arg6: memref<1x1x128xf32, #tpu.memory_space<vmem>>, %arg7: memref<32x128xf32, #tpu.memory_space<vmem>>) attributes {dimension_semantics = [#tpu.dimension_semantics<parallel>], iteration_bounds = array<i64: 2>, scalar_prefetch = 0 : i64, scratch_operands = 1 : i64, tpu.core_type = #tpu.core_type<tc>, window_params = [{transform_indices = @transform_0, window_bounds = array<i64: 1, 16, 32>}, {pipeline_mode = #tpu.pipeline_mode<synchronous>, transform_indices = @transform_1, window_bounds = array<i64: 5, 128, 24>}, {pipeline_mode = #tpu.pipeline_mode<synchronous>, transform_indices = @transform_2, window_bounds = array<i64: 1, 24>}, {pipeline_mode = #tpu.pipeline_mode<synchronous>, transform_indices = @transform_3, window_bounds = array<i64: 24, 128>}, {pipeline_mode = #tpu.pipeline_mode<synchronous>, transform_indices = @transform_4, window_bounds = array<i64: 1, 128>}, {transform_indices = @transform_5, window_bounds = array<i64: 1, 1, 128>}]} {
    %cst = arith.constant 0.000000e+00 : f32
    %0 = vector.broadcast %cst : f32 to vector<32x128xf32>
    %c0 = arith.constant 0 : index
    %c0_0 = arith.constant 0 : index
    %1 = vector.load %arg7[%c0, %c0_0] : memref<32x128xf32, #tpu.memory_space<vmem>>, vector<32x128xf32>
    tpu.vector_store %arg7[%c0, %c0_0], %0 {strides = array<i32>} : memref<32x128xf32, #tpu.memory_space<vmem>>, vector<32x128xf32>,
    %c0_1 = arith.constant 0 : index
    %c0_2 = arith.constant 0 : index
    %c0_3 = arith.constant 0 : index
    %2 = vector.load %arg1[%c0_1, %c0_2, %c0_3] : memref<1x16x32xf32, #tpu.memory_space<vmem>>, vector<1x16x32xf32>
    %3 = vector.shape_cast %2 : vector<1x16x32xf32> to vector<16x32xf32>
    %c3 = arith.constant 3 : index
    %c0_4 = arith.constant 0 : index
    %4 = vector.load %arg7[%c3, %c0_4] : memref<32x128xf32, #tpu.memory_space<vmem>>, vector<16x32xf32>
    tpu.vector_store %arg7[%c3, %c0_4], %3 {strides = array<i32>} : memref<32x128xf32, #tpu.memory_space<vmem>>, vector<16x32xf32>,
    %c0_5 = arith.constant 0 : index
    %c0_6 = arith.constant 0 : index
    %c0_7 = arith.constant 0 : index
    %5 = vector.load %arg2[%c0_5, %c0_6, %c0_7] : memref<5x128x24xf32, #tpu.memory_space<vmem>>, vector<5x128x24xf32>
    %cst_8 = arith.constant 0.000000e+00 : f32
    %6 = vector.broadcast %cst_8 : f32 to vector<22x24xf32>
    %c0_9 = arith.constant 0 : index
    %c0_10 = arith.constant 0 : index
    %7 = vector.load %arg7[%c0_9, %c0_10] : memref<32x128xf32, #tpu.memory_space<vmem>>, vector<22x128xf32>
    %8 = vector.extract_strided_slice %5 {offsets = [0, 0, 0], sizes = [1, 128, 24], strides = [1, 1, 1]} : vector<5x128x24xf32> to vector<1x128x24xf32>
    %9 = vector.shape_cast %8 : vector<1x128x24xf32> to vector<128x24xf32>
    %cst_11 = arith.constant dense<0.000000e+00> : vector<22x24xf32>
    %10 = tpu.matmul %7, %9, %cst_11 {dimension_numbers = #tpu.dot_dimension_numbers<[1], [0], [0], [1], [0, 0, 1, 1], [], []>} : vector<22x128xf32>, vector<128x24xf32>, vector<22x24xf32> -> vector<22x24xf32>
    %11 = arith.addf %6, %10 : vector<22x24xf32>
    %c1 = arith.constant 1 : index
    %c0_12 = arith.constant 0 : index
    %12 = vector.load %arg7[%c1, %c0_12] : memref<32x128xf32, #tpu.memory_space<vmem>>, vector<22x128xf32>
    %13 = vector.extract_strided_slice %5 {offsets = [1, 0, 0], sizes = [1, 128, 24], strides = [1, 1, 1]} : vector<5x128x24xf32> to vector<1x128x24xf32>
    %14 = vector.shape_cast %13 : vector<1x128x24xf32> to vector<128x24xf32>
    %cst_13 = arith.constant dense<0.000000e+00> : vector<22x24xf32>
    %15 = tpu.matmul %12, %14, %cst_13 {dimension_numbers = #tpu.dot_dimension_numbers<[1], [0], [0], [1], [0, 0, 1, 1], [], []>} : vector<22x128xf32>, vector<128x24xf32>, vector<22x24xf32> -> vector<22x24xf32>
    %16 = arith.addf %11, %15 : vector<22x24xf32>
    %c2 = arith.constant 2 : index
    %c0_14 = arith.constant 0 : index
    %17 = vector.load %arg7[%c2, %c0_14] : memref<32x128xf32, #tpu.memory_space<vmem>>, vector<22x128xf32>
    %18 = vector.extract_strided_slice %5 {offsets = [2, 0, 0], sizes = [1, 128, 24], strides = [1, 1, 1]} : vector<5x128x24xf32> to vector<1x128x24xf32>
    %19 = vector.shape_cast %18 : vector<1x128x24xf32> to vector<128x24xf32>
    %cst_15 = arith.constant dense<0.000000e+00> : vector<22x24xf32>
    %20 = tpu.matmul %17, %19, %cst_15 {dimension_numbers = #tpu.dot_dimension_numbers<[1], [0], [0], [1], [0, 0, 1, 1], [], []>} : vector<22x128xf32>, vector<128x24xf32>, vector<22x24xf32> -> vector<22x24xf32>
    %21 = arith.addf %16, %20 : vector<22x24xf32>
    %c3_16 = arith.constant 3 : index
    %c0_17 = arith.constant 0 : index
    %22 = vector.load %arg7[%c3_16, %c0_17] : memref<32x128xf32, #tpu.memory_space<vmem>>, vector<22x128xf32>
    %23 = vector.extract_strided_slice %5 {offsets = [3, 0, 0], sizes = [1, 128, 24], strides = [1, 1, 1]} : vector<5x128x24xf32> to vector<1x128x24xf32>
    %24 = vector.shape_cast %23 : vector<1x128x24xf32> to vector<128x24xf32>
    %cst_18 = arith.constant dense<0.000000e+00> : vector<22x24xf32>
    %25 = tpu.matmul %22, %24, %cst_18 {dimension_numbers = #tpu.dot_dimension_numbers<[1], [0], [0], [1], [0, 0, 1, 1], [], []>} : vector<22x128xf32>, vector<128x24xf32>, vector<22x24xf32> -> vector<22x24xf32>
    %26 = arith.addf %21, %25 : vector<22x24xf32>
    %c4 = arith.constant 4 : index
    %c0_19 = arith.constant 0 : index
    %27 = vector.load %arg7[%c4, %c0_19] : memref<32x128xf32, #tpu.memory_space<vmem>>, vector<22x128xf32>
    %28 = vector.extract_strided_slice %5 {offsets = [4, 0, 0], sizes = [1, 128, 24], strides = [1, 1, 1]} : vector<5x128x24xf32> to vector<1x128x24xf32>
    %29 = vector.shape_cast %28 : vector<1x128x24xf32> to vector<128x24xf32>
    %cst_20 = arith.constant dense<0.000000e+00> : vector<22x24xf32>
    %30 = tpu.matmul %27, %29, %cst_20 {dimension_numbers = #tpu.dot_dimension_numbers<[1], [0], [0], [1], [0, 0, 1, 1], [], []>} : vector<22x128xf32>, vector<128x24xf32>, vector<22x24xf32> -> vector<22x24xf32>
    %31 = arith.addf %26, %30 : vector<22x24xf32>
    %c0_21 = arith.constant 0 : index
    %c0_22 = arith.constant 0 : index
    %32 = vector.load %arg3[%c0_21, %c0_22] : memref<1x24xf32, #tpu.memory_space<vmem>>, vector<1x24xf32>
    %33 = vector.broadcast %32 : vector<1x24xf32> to vector<22x24xf32>
    %34 = arith.addf %31, %33 : vector<22x24xf32>
    %cst_23 = arith.constant 0.000000e+00 : f32
    %35 = vector.broadcast %cst_23 : f32 to vector<22x24xf32>
    %36 = arith.maximumf %34, %35 : vector<22x24xf32>
    %c16_i32 = arith.constant 16 : i32
    %37 = vector.broadcast %c16_i32 : i32 to vector<22x8xi32>
    %c17_i32 = arith.constant 17 : i32
    %38 = vector.broadcast %c17_i32 : i32 to vector<22x8xi32>
    %c18_i32 = arith.constant 18 : i32
    %39 = vector.broadcast %c18_i32 : i32 to vector<22x8xi32>
    %40 = tpu.concatenate %37, %38, %39 in 1 : vector<22x8xi32>, vector<22x8xi32>, vector<22x8xi32> -> vector<22x24xi32>
    %41 = tpu.iota {dimensions = array<i32: 0>} : vector<22x24xi32>
    %42 = arith.cmpi slt, %41, %40 : vector<22x24xi32>
    %cst_24 = arith.constant 0.000000e+00 : f32
    %43 = vector.broadcast %cst_24 : f32 to vector<22x24xf32>
    %44 = arith.select %42, %36, %43 : vector<22x24xi1>, vector<22x24xf32>
    %cst_25 = arith.constant dense<0xFF800000> : vector<24xf32>
    %45 = vector.multi_reduction <maximumf>, %44, %cst_25 [0] : vector<22x24xf32> to vector<24xf32>
    %46 = vector.shape_cast %45 : vector<24xf32> to vector<1x24xf32>
    %c0_26 = arith.constant 0 : index
    %c0_27 = arith.constant 0 : index
    %47 = vector.load %arg4[%c0_26, %c0_27] : memref<24x128xf32, #tpu.memory_space<vmem>>, vector<24x128xf32>
    %cst_28 = arith.constant dense<0.000000e+00> : vector<1x128xf32>
    %48 = tpu.matmul %46, %47, %cst_28 {dimension_numbers = #tpu.dot_dimension_numbers<[1], [0], [0], [1], [0, 0, 1, 1], [], []>} : vector<1x24xf32>, vector<24x128xf32>, vector<1x128xf32> -> vector<1x128xf32>
    %c0_29 = arith.constant 0 : index
    %c0_30 = arith.constant 0 : index
    %49 = vector.load %arg5[%c0_29, %c0_30] : memref<1x128xf32, #tpu.memory_space<vmem>>, vector<1x128xf32>
    %50 = arith.addf %48, %49 : vector<1x128xf32>
    %cst_31 = arith.constant 0.000000e+00 : f32
    %51 = vector.broadcast %cst_31 : f32 to vector<1x128xf32>
    %52 = arith.subf %51, %50 : vector<1x128xf32>
    %53 = math.exp %52 : vector<1x128xf32>
    %cst_32 = arith.constant 1.000000e+00 : f32
    %54 = vector.broadcast %cst_32 : f32 to vector<1x128xf32>
    %55 = arith.addf %54, %53 : vector<1x128xf32>
    %cst_33 = arith.constant 1.000000e+00 : f32
    %56 = vector.broadcast %cst_33 : f32 to vector<1x128xf32>
    %57 = arith.divf %56, %55 : vector<1x128xf32>
    %c0_34 = arith.constant 0 : index
    %c0_35 = arith.constant 0 : index
    %c0_36 = arith.constant 0 : index
    %58 = vector.load %arg6[%c0_34, %c0_35, %c0_36] : memref<1x1x128xf32, #tpu.memory_space<vmem>>, vector<1x1x128xf32>
    %59 = vector.shape_cast %58 : vector<1x1x128xf32> to vector<1x128xf32>
    %60 = vector.shape_cast %57 : vector<1x128xf32> to vector<1x1x128xf32>
    tpu.vector_store %arg6[%c0_34, %c0_35, %c0_36], %60 {strides = array<i32>} : memref<1x1x128xf32, #tpu.memory_space<vmem>>, vector<1x1x128xf32>,
    return
  }
  func.func @transform_0(%arg0: i32) -> (i32, i32, i32) {
    %c0_i32 = arith.constant 0 : i32
    %c0_i32_0 = arith.constant 0 : i32
    %c0_i32_1 = arith.constant 0 : i32
    return %arg0, %c0_i32, %c0_i32_0 : i32, i32, i32
  }
  func.func @transform_1(%arg0: i32) -> (i32, i32, i32) {
    %c0_i32 = arith.constant 0 : i32
    %c0_i32_0 = arith.constant 0 : i32
    %c0_i32_1 = arith.constant 0 : i32
    %c0_i32_2 = arith.constant 0 : i32
    return %c0_i32, %c0_i32_0, %c0_i32_1 : i32, i32, i32
  }
  func.func @transform_2(%arg0: i32) -> (i32, i32) {
    %c0_i32 = arith.constant 0 : i32
    %c0_i32_0 = arith.constant 0 : i32
    %c0_i32_1 = arith.constant 0 : i32
    return %c0_i32, %c0_i32_0 : i32, i32
  }
  func.func @transform_3(%arg0: i32) -> (i32, i32) {
    %c0_i32 = arith.constant 0 : i32
    %c0_i32_0 = arith.constant 0 : i32
    %c0_i32_1 = arith.constant 0 : i32
    return %c0_i32, %c0_i32_0 : i32, i32
  }
  func.func @transform_4(%arg0: i32) -> (i32, i32) {
    %c0_i32 = arith.constant 0 : i32
    %c0_i32_0 = arith.constant 0 : i32
    %c0_i32_1 = arith.constant 0 : i32
    return %c0_i32, %c0_i32_0 : i32, i32
  }
  func.func @transform_5(%arg0: i32) -> (i32, i32, i32) {
    %c0_i32 = arith.constant 0 : i32
    %c0_i32_0 = arith.constant 0 : i32
    %c0_i32_1 = arith.constant 0 : i32
    return %arg0, %c0_i32, %c0_i32_0 : i32, i32, i32
  }
}

</mosaic_0001>

<bundles_post_ra>
// kernel: tpu_custom_call.1
= control target key start
LH: loop header
LB: loop body
LE: loop exit
PB: predicated region body
PF: predicated region fallthrough
CT: control target
= control target key end

     0   :  { %10 = vsyncpa [#allocation4], 0  ;;  %s1963_s0 = inlined_call_operand.vmem [shape: f32[2,16,32], index: 0, kind: input, shape index: {}]   ;;  %s1964_s1 = inlined_call_operand.vmem [shape: f32[5,128,24], index: 1, kind: input, shape index: {}]   ;;  %s1965_s2 = inlined_call_operand.vmem [shape: f32[1,24], index: 2, kind: input, shape index: {}]   ;;  %s1966_s3 = inlined_call_operand.vmem [shape: f32[24,128], index: 3, kind: input, shape index: {}]   ;;  %s1967_s4 = inlined_call_operand.vmem [shape: f32[1,128], index: 4, kind: input, shape index: {}]   ;;  %s1968_s5 = inlined_call_operand.hbm [shape: f32[2,1,128], index: 5, kind: output, shape index: {}]  }
   0x1   :  { %12 = vsyncpa [#allocation4 + $0x1], 0  ;;  %s1521_s18 = smov 0   ;;  %s1523_s19 = smov 0  }
   0x2   :  { %s1525_s20 = smov 0   ;;  %s1527_s21 = smov 0  }
   0x3 LB: > { %s1542_s22 = sadd.s32 4294967295, %s1484_s21   ;;  %s927_s23 = sadd.s32 4294967294, %s1484_s21   ;;  %s1484_s21 = sphi %s1527_s21, %s1974_s21   ;;  %s1480_s20 = sphi %s1525_s20, %s1973_s20   ;;  %s1476_s19 = sphi %s1523_s19, %s1972_s19   ;;  %s1472_s18 = sphi %s1521_s18, %s1971_s18  }
   0x4   : > { %s1546_s24 = sadd.s32 1, %s1484_s21   ;;  %s135_s25 = sadd.s32 1, %s1480_s20 }
   0x5   : > { %s132_s26 = ssub.s32 %s1484_s21, %s1546_s24  ;;  %p145_p0 = scmp.ne.s32.totalorder %s1480_s20, %s1476_s19 }
   0x6   : > { %p133_p1 = scmp.eq.s32.totalorder %s132_s26, 0  ;;  %p146_p2 = scmp.eq.s32.totalorder %s1542_s22, 1 }
   0x7   : > { %p151_p3 = scmp.ne.s32.totalorder %s1476_s19, %s1472_s18  ;;  %p152_p4 = scmp.eq.s32.totalorder %s927_s23, 1 }
   0x8   : > { %s1557_s27 = scalar_select %p133_p1, %s1480_s20, %s135_s25  }
   0x9   : > { %p1559_p5 = por %p146_p2, %p145_p0  ;;  %p1563_p6 = por %p152_p4, %p151_p3 }
   0xa   : > { %p930_p7 = scmp.ge.s32.totalorder %s1484_s21, 1  ;;  %p190_p8 = scmp.lt.s32.totalorder %s1484_s21, 3 }
   0xc   : > { %p191_p9 = pnand %p930_p7, %p190_p8 }
   0xd   : > { %v247_v0 = vld [vmem:[%s1964_s1 + $0x80] sm:$0xff] (!%p191_p9)  ;;  %v248_v1 = vld [vmem:[%s1964_s1 + $0x88] sm:$0xff] (!%p191_p9)  ;;  %v1486_v3 = vmov (!%p191_p9), 0.0|0.0   ;;  %v249_v6 = vld [vmem:[%s1964_s1 + $0x90] sm:$0xff] (!%p191_p9)  ;;  %v1487_v8 = vmov (!%p191_p9), 0.0   ;;  %p217_p10 = scmp.lt.s32.totalorder (!%p191_p9), %s1542_s22, 1 }
   0xe   : > { %194 = sbr.rel (%p191_p9) target bundleno = 609 (0x261), region = 40  ;;  %v231_v2 = vld [vmem:[%s1964_s1] sm:$0xff] (!%p191_p9)  ;;  %1252 = vmatprep.subr.bf16.mxu0 (!%p191_p9), %v1486_v3  ;;  %v1253_v4 = vpack.c.bf16 (!%p191_p9), %v248_v1, %v247_v0  ;;  %1276 = vmatprep.subr.bf16.mxu1 (!%p191_p9), %v1486_v3  ;;  %v232_v5 = vld [vmem:[%s1964_s1 + $0x8] sm:$0xff] (!%p191_p9)  ;;  %v250_v7 = vld [vmem:[%s1964_s1 + $0x98] sm:$0xff] (!%p191_p9)  ;;  %222 = vst [vmem:[#allocation2] sm:$0xff] (!%p191_p9), %v1487_v8  ;;  %vm1488_vm0 = vmmov (!%p191_p9), 0  }
   0xf   : > { %223 = vst [vmem:[#allocation2 + $0x8] sm:$0xff] (!%p191_p9), %v1487_v8  ;;  %224 = vst [vmem:[#allocation2 + $0x10] sm:$0xff] (!%p191_p9), %v1487_v8  ;;  %v1277_v9 = vpack.c.bf16 (!%p191_p9), %v232_v5, %v231_v2  ;;  %v233_v10 = vld [vmem:[%s1964_s1 + $0x10] sm:$0xff] (!%p191_p9)  ;;  %v234_v11 = vld [vmem:[%s1964_s1 + $0x18] sm:$0xff] (!%p191_p9)  ;;  %1070 = vmatprep.mubr.msk.f32.mxu0 (!%p191_p9), %vm1488_vm0, %v1487_v8  ;;  %1111 = vmatprep.mubr.msk.f32.mxu1 (!%p191_p9), %vm1488_vm0, %v1487_v8  ;;  %v1256_v12 = vpack.c.bf16 (!%p191_p9), %v250_v7, %v249_v6  ;;  %vm228_vm1 = vcmask (!%p191_p9), 261120   ;;  %vm748_vm2 = vcmask (!%p191_p9), 64512  }
  0x10   : > { %225 = vst [vmem:[#allocation2 + $0x18] sm:$0xff] (!%p191_p9), %v1487_v8  ;;  %1254 = vmatpush3.bf16.msra.mxu0 (!%p191_p9), %v1253_v4  ;;  %v1280_v13 = vpack.c.bf16 (!%p191_p9), %v234_v11, %v233_v10  ;;  %v251_v14 = vld [vmem:[%s1964_s1 + $0xa0] sm:$0xff] (!%p191_p9)  ;;  %v252_v15 = vld [vmem:[%s1964_s1 + $0xa8] sm:$0xff] (!%p191_p9)  ;;  %v253_v20 = vld [vmem:[%s1964_s1 + $0xb0] sm:$0xff] (!%p191_p9)  ;;  %vm750_vm3 = vcmask (!%p191_p9), 130048   ;;  %vm762_vm6 = vcmask (!%p191_p9), 195584  }
  0x11   : > { %1278 = vmatpush3.bf16.msra.mxu1 (!%p191_p9), %v1277_v9  ;;  %1255 = vmatprep.subr.bf16.mxu0 (!%p191_p9), %v1486_v3  ;;  %v235_v16 = vld [vmem:[%s1964_s1 + $0x20] sm:$0xff] (!%p191_p9)  ;;  %v236_v17 = vld [vmem:[%s1964_s1 + $0x28] sm:$0xff] (!%p191_p9)  ;;  %v1259_v18 = vpack.c.bf16 (!%p191_p9), %v252_v15, %v251_v14  ;;  %v254_v21 = vld [vmem:[%s1964_s1 + $0xb8] sm:$0xff] (!%p191_p9)  ;;  %vm765_vm8 = vcmask (!%p191_p9), 193536   ;;  %s215_s6 = sand.u32 (!%p191_p9), 1, %s1476_s19  }
  0x12   : > { %1279 = vmatprep.subr.bf16.mxu1 (!%p191_p9), %v1486_v3  ;;  %v1283_v19 = vpack.c.bf16 (!%p191_p9), %v236_v17, %v235_v16  ;;  %v237_v22 = vld [vmem:[%s1964_s1 + $0x30] sm:$0xff] (!%p191_p9)  ;;  %v238_v23 = vld [vmem:[%s1964_s1 + $0x38] sm:$0xff] (!%p191_p9)  ;;  %v1262_v25 = vpack.c.bf16 (!%p191_p9), %v254_v21, %v253_v20  ;;  %v255_v27 = vld [vmem:[%s1964_s1 + $0xc0] sm:$0xff] (!%p191_p9)  ;;  %s216_s7 = scalar_lea.vmem (!%p191_p9), [#allocation3], %s215_s6  ;;  %s860_s12 = scalar_lea.sflag (!%p191_p9), [#allocation4], %s215_s6 }
  0x13   : > { %v1286_v26 = vpack.c.bf16 (!%p191_p9), %v238_v23, %v237_v22  ;;  %v256_v28 = vld [vmem:[%s1964_s1 + $0xc8] sm:$0xff] (!%p191_p9)  ;;  %v239_v29 = vld [vmem:[%s1964_s1 + $0x40] sm:$0xff] (!%p191_p9)  ;;  %v257_v33 = vld [vmem:[%s1964_s1 + $0xd0] sm:$0xff] (!%p191_p9)  ;;  %s872_s8 = sshll.u32 (!%p191_p9), %s216_s7, 4  ;;  %s1923_s8 = int_to_ptr.vmem [resolvable:$true] %s872_s8 }
  0x14   : > { %1257 = vmatpush3.bf16.msra.mxu0 (!%p191_p9), %v1256_v12  ;;  %v240_v30 = vld [vmem:[%s1964_s1 + $0x48] sm:$0xff] (!%p191_p9)  ;;  %v1265_v31 = vpack.c.bf16 (!%p191_p9), %v256_v28, %v255_v27  ;;  %v258_v34 = vld [vmem:[%s1964_s1 + $0xd8] sm:$0xff] (!%p191_p9)  ;;  %v241_v35 = vld [vmem:[%s1964_s1 + $0x50] sm:$0xff] (!%p191_p9)  ;;  %s1422_s13 = scalar_lea.vmem (!%p191_p9), %s1923_s8, 16 }
  0x15   : > { %s218_s30 = scalar_select %p217_p10, %s1542_s22, 1  ;;  %1281 = vmatpush3.bf16.msra.mxu1 %v1280_v13  ;;  %1258 = vmatprep.subr.bf16.mxu0 %v1486_v3  ;;  %v1289_v32 = vpack.c.bf16 %v240_v30, %v239_v29  ;;  %v242_v36 = vld [vmem:[%s1964_s1 + $0x58] sm:$0xff]  ;;  %v1268_v37 = vpack.c.bf16 %v258_v34, %v257_v33  ;;  %v259_v40 = vld [vmem:[%s1964_s1 + $0xe0] sm:$0xff]  ;;  %v260_v41 = vld [vmem:[%s1964_s1 + $0xe8] sm:$0xff] }
  0x16   : > { %1282 = vmatprep.subr.bf16.mxu1 %v1486_v3  ;;  %v1292_v39 = vpack.c.bf16 %v242_v36, %v241_v35  ;;  %v243_v42 = vld [vmem:[%s1964_s1 + $0x60] sm:$0xff]  ;;  %v244_v43 = vld [vmem:[%s1964_s1 + $0x68] sm:$0xff]  ;;  %v1271_v44 = vpack.c.bf16 %v260_v41, %v259_v40  ;;  %v261_v46 = vld [vmem:[%s1964_s1 + $0xf0] sm:$0xff]  ;;  %p1423_p11 = scmp.ne.s32.totalorder %s1923_s8, %s1422_s13 }
  0x17   : > { %s938_s14 = sshll.u32 %s218_s30, 4  ;;  %v1295_v45 = vpack.c.bf16 %v244_v43, %v243_v42  ;;  %v262_v47 = vld [vmem:[%s1964_s1 + $0xf8] sm:$0xff]  ;;  %v245_v48 = vld [vmem:[%s1964_s1 + $0x70] sm:$0xff]  ;;  %v263_v52 = vld [vmem:[%s1964_s1 + $0x100] sm:$0xff]  ;;  %s935_s30 = sshll.u32 %s1542_s22, 4 }
  0x18   : > { %s1622_s17 = scalar_lea.vmem %s1963_s0, %s938_s14  ;;  %1260 = vmatpush3.bf16.msra.mxu0 %v1259_v18  ;;  %v246_v49 = vld [vmem:[%s1964_s1 + $0x78] sm:$0xff]  ;;  %v1274_v50 = vpack.c.bf16 %v262_v47, %v261_v46  ;;  %v264_v53 = vld [vmem:[%s1964_s1 + $0x108] sm:$0xff]  ;;  %v279_v54 = vld [vmem:[%s1964_s1 + $0x180] sm:$0xff]  ;;  %s1921_s11 = scalar_lea.hbm %s1968_s5, %s935_s30 }
  0x19   : > { %v226_v24 = vld [vmem:[%s1622_s17] sm:$0xff]  ;;  %1284 = vmatpush3.bf16.msra.mxu1 %v1283_v19  ;;  %1261 = vmatprep.subr.bf16.mxu0 %v1486_v3  ;;  %v227_v38 = vld [vmem:[%s1622_s17 + $0x8] sm:$0xff]  ;;  %v1298_v51 = vpack.c.bf16 %v246_v49, %v245_v48  ;;  %v1301_v57 = vpack.c.bf16 %v264_v53, %v263_v52  ;;  %v265_v60 = vld [vmem:[%s1964_s1 + $0x110] sm:$0xff]  ;;  %p1424_p12 = pnand %p1423_p11, %p1559_p5  ;;  %s1490_s22 = smov [#allocation3]  }
  0x1a   : > { %229 = vst.msk [vmem:[#allocation2 + $0x3] sm:$0xff] %vm228_vm1, %v226_v24  ;;  %1285 = vmatprep.subr.bf16.mxu1 %v1486_v3  ;;  %230 = vst.msk [vmem:[#allocation2 + $0xb] sm:$0xff] %vm228_vm1, %v227_v38  ;;  %v280_v55 = vld [vmem:[%s1964_s1 + $0x188] sm:$0xff]  ;;  %v266_v61 = vld [vmem:[%s1964_s1 + $0x118] sm:$0xff]  ;;  %s1426_s14 = sshll.u32 %s1490_s22, 4  ;;  %s1427_s14 = int_to_ptr.vmem [resolvable:$false] %s1426_s14 }
  0x1b   : > { %v1325_v59 = vpack.c.bf16 %v280_v55, %v279_v54  ;;  %v281_v62 = vld [vmem:[%s1964_s1 + $0x190] sm:$0xff]  ;;  %v282_v63 = vld [vmem:[%s1964_s1 + $0x198] sm:$0xff]  ;;  %v1304_v0 = vpack.c.bf16 %v266_v61, %v265_v60  ;;  %v267_v4 = vld [vmem:[%s1964_s1 + $0x120] sm:$0xff]  ;;  %p1425_p13 = pneg %p1424_p12  ;;  %s1428_s15 = scalar_lea.vmem %s1427_s14, 32 }
  0x1c   : > { %1263 = vmatpush3.bf16.msra.mxu0 %v1262_v25  ;;  %v1328_v2 = vpack.c.bf16 %v282_v63, %v281_v62  ;;  %v268_v5 = vld [vmem:[%s1964_s1 + $0x128] sm:$0xff]  ;;  %v283_v7 = vld [vmem:[%s1964_s1 + $0x1a0] sm:$0xff]  ;;  %v269_v13 = vld [vmem:[%s1964_s1 + $0x130] sm:$0xff]  ;;  %p1429_p0 = scmp.lt.s32.totalorder %s1923_s8, %s1427_s14  ;;  %p1430_p1 = scmp.lt.s32.totalorder %s1428_s15, %s1422_s13 }
  0x1d   : > { %1287 = vmatpush3.bf16.msra.mxu1 %v1286_v26  ;;  %1264 = vmatprep.subr.bf16.mxu0 %v1486_v3  ;;  %v284_v9 = vld [vmem:[%s1964_s1 + $0x1a8] sm:$0xff]  ;;  %v1307_v10 = vpack.c.bf16 %v268_v5, %v267_v4  ;;  %v270_v14 = vld [vmem:[%s1964_s1 + $0x138] sm:$0xff]  ;;  %v285_v16 = vld [vmem:[%s1964_s1 + $0x1b0] sm:$0xff] }
  0x1e   : > { %1288 = vmatprep.subr.bf16.mxu1 %v1486_v3  ;;  %v1331_v12 = vpack.c.bf16 %v284_v9, %v283_v7  ;;  %v286_v17 = vld [vmem:[%s1964_s1 + $0x1b8] sm:$0xff]  ;;  %v1310_v18 = vpack.c.bf16 %v270_v14, %v269_v13  ;;  %v271_v20 = vld [vmem:[%s1964_s1 + $0x140] sm:$0xff]  ;;  %v272_v21 = vld [vmem:[%s1964_s1 + $0x148] sm:$0xff]  ;;  %p1431_p2 = por %p1430_p1, %p1429_p0 }
  0x1f   : > { %v1334_v19 = vpack.c.bf16 %v286_v17, %v285_v16  ;;  %v287_v22 = vld [vmem:[%s1964_s1 + $0x1c0] sm:$0xff]  ;;  %v288_v23 = vld [vmem:[%s1964_s1 + $0x1c8] sm:$0xff]  ;;  %v1313_v24 = vpack.c.bf16 %v272_v21, %v271_v20  ;;  %v273_v26 = vld [vmem:[%s1964_s1 + $0x150] sm:$0xff] }
  0x20   : > { %1266 = vmatpush3.bf16.msra.mxu0 %v1265_v31  ;;  %v1337_v25 = vpack.c.bf16 %v288_v23, %v287_v22  ;;  %v274_v27 = vld [vmem:[%s1964_s1 + $0x158] sm:$0xff]  ;;  %v289_v28 = vld [vmem:[%s1964_s1 + $0x1d0] sm:$0xff]  ;;  %v276_v33 = vld [vmem:[%s1964_s1 + $0x168] sm:$0xff]  ;;  %p1432_p3 = pnand %p1431_p2, %p1425_p13 }
  0x21   : > { %1290 = vmatpush3.bf16.msra.mxu1 %v1289_v32  ;;  %1267 = vmatprep.subr.bf16.mxu0 %v1486_v3  ;;  %v314_v56 = vld [vmem:[#allocation2 + $0x1] sm:$0xff]  ;;  %v315_v1 = vld [vmem:[#allocation2 + $0x9] sm:$0xff]  ;;  %v316_v11 = vld [vmem:[#allocation2 + $0x11] sm:$0x3f]  ;;  %v1316_v30 = vpack.c.bf16 %v274_v27, %v273_v26 }
  0x22   : > { %1291 = vmatprep.subr.bf16.mxu1 %v1486_v3  ;;  %v311_v58 = vld [vmem:[#allocation2] sm:$0xff]  ;;  %v312_v6 = vld [vmem:[#allocation2 + $0x8] sm:$0xff]  ;;  %v313_v15 = vld [vmem:[#allocation2 + $0x10] sm:$0x3f] }
  0x23   : > { %v290_v29 = vld [vmem:[%s1964_s1 + $0x1d8] sm:$0xff]  ;;  %v275_v32 = vld [vmem:[%s1964_s1 + $0x160] sm:$0xff]  ;;  %v292_v35 = vld [vmem:[%s1964_s1 + $0x1e8] sm:$0xff] }
  0x24   : > { %1269 = vmatpush3.bf16.msra.mxu0 %v1268_v37  ;;  %v1340_v31 = vpack.c.bf16 %v290_v29, %v289_v28  ;;  %v291_v34 = vld [vmem:[%s1964_s1 + $0x1e0] sm:$0xff]  ;;  %v1319_v36 = vpack.c.bf16 %v276_v33, %v275_v32  ;;  %v277_v38 = vld [vmem:[%s1964_s1 + $0x170] sm:$0xff]  ;;  %v294_v41 = vld [vmem:[%s1964_s1 + $0x1f8] sm:$0xff] }
  0x25   : > { %1293 = vmatpush3.bf16.msra.mxu1 %v1292_v39  ;;  %1270 = vmatprep.subr.bf16.mxu0 %v1486_v3  ;;  %v1343_v37 = vpack.c.bf16 %v292_v35, %v291_v34  ;;  %v278_v39 = vld [vmem:[%s1964_s1 + $0x178] sm:$0xff]  ;;  %v293_v40 = vld [vmem:[%s1964_s1 + $0x1f0] sm:$0xff]  ;;  %v477_v46 = vld [vmem:[#allocation2 + $0x2] sm:$0xff] }
  0x26   : > { %1294 = vmatprep.subr.bf16.mxu1 %v1486_v3  ;;  %v1322_v42 = vpack.c.bf16 %v278_v39, %v277_v38  ;;  %v1346_v43 = vpack.c.bf16 %v294_v41, %v293_v40  ;;  %v563_v48 = vld [vmem:[#allocation2 + $0x3] sm:$0xff]  ;;  %v297_v49 = vld [vmem:[%s1964_s1 + $0x210] sm:$0xff]  ;;  %v302_v60 = vld [vmem:[%s1964_s1 + $0x238] sm:$0xff] }
  0x27   : > { %v564_v53 = vld [vmem:[#allocation2 + $0xb] sm:$0xff]  ;;  %v299_v54 = vld [vmem:[%s1964_s1 + $0x220] sm:$0xff]  ;;  %v651_v14 = vld [vmem:[#allocation2 + $0x14] sm:$0x3f] }
  0x28   : > { %1272 = vmatpush3.bf16.msra.mxu0 %v1271_v44  ;;  %v295_v44 = vld [vmem:[%s1964_s1 + $0x200] sm:$0xff]  ;;  %v300_v55 = vld [vmem:[%s1964_s1 + $0x228] sm:$0xff]  ;;  %v309_v9 = vld [vmem:[%s1964_s1 + $0x270] sm:$0xff] }
  0x29   : > { %1296 = vmatpush3.bf16.msra.mxu1 %v1295_v45  ;;  %1273 = vmatprep.subr.bf16.mxu0 %v1486_v3  ;;  %v296_v45 = vld [vmem:[%s1964_s1 + $0x208] sm:$0xff]  ;;  %v303_v62 = vld [vmem:[%s1964_s1 + $0x240] sm:$0xff]  ;;  %v777_v17 = vld [vmem:[%s1966_s3 + $0x10] sm:$0xff] }
  0x2a   : > { %1297 = vmatprep.subr.bf16.mxu1 %v1486_v3  ;;  %v1349_v47 = vpack.c.bf16 %v296_v45, %v295_v44  ;;  %v304_v63 = vld [vmem:[%s1964_s1 + $0x248] sm:$0xff]  ;;  %v307_v5 = vld [vmem:[%s1964_s1 + $0x260] sm:$0xff] }
  0x2b   : > { %v650_v13 = vld [vmem:[#allocation2 + $0xc] sm:$0xff] }
  0x2c   : > { %1275 = vmatpush3.bf16.msra.mxu0 %v1274_v50  ;;  %v298_v50 = vld [vmem:[%s1964_s1 + $0x218] sm:$0xff] }
  0x2d   : > { %1299 = vmatpush3.bf16.msra.mxu1 %v1298_v51  ;;  %1300 = vmatprep.subr.bf16.mxu0 %v1486_v3  ;;  %v478_v51 = vld [vmem:[#allocation2 + $0xa] sm:$0xff]  ;;  %v1352_v52 = vpack.c.bf16 %v298_v50, %v297_v49  ;;  %v752_v50 = vlaneseq }
  0x2e   : > { %1324 = vmatprep.subr.bf16.mxu1 %v1486_v3 }
  0x2f   : > { %1071 = vmatmul.mubr.f32.vlgmr.msra.gmra.mrb[0].mxu0 %v314_v56  ;;  %v479_v56 = vld [vmem:[#allocation2 + $0x12] sm:$0x3f] }
  0x30   : > { %1112 = vmatmul.mubr.f32.vlgmr.msra.gmra.mrb[0].mxu1 %v311_v58  ;;  %1302 = vmatpush3.bf16.msra.mxu0 %v1301_v57  ;;  %v1355_v57 = vpack.c.bf16 %v300_v55, %v299_v54  ;;  %v565_v58 = vld [vmem:[#allocation2 + $0x13] sm:$0x3f] }
  0x31   : > { %1326 = vmatpush3.bf16.msra.mxu1 %v1325_v59  ;;  %1303 = vmatprep.subr.bf16.mxu0 %v1486_v3  ;;  %v301_v59 = vld [vmem:[%s1964_s1 + $0x230] sm:$0xff] }
  0x32   : > { %1327 = vmatprep.subr.bf16.mxu1 %v1486_v3  ;;  %1073 = vmatprep.mubr.msk.f32.mxu0 %vm1488_vm0, %v1487_v8  ;;  %v1358_v61 = vpack.c.bf16 %v302_v60, %v301_v59 }
  0x33   : > { %1074 = vmatmul.mubr.f32.gmra.mrb[2].mxu0 %v315_v1  ;;  %1114 = vmatprep.mubr.msk.f32.mxu1 %vm1488_vm0, %v1487_v8  ;;  %v305_v1 = vld [vmem:[%s1964_s1 + $0x250] sm:$0xff] }
  0x34   : > { %1305 = vmatpush3.bf16.msra.mxu0 %v1304_v0  ;;  %1115 = vmatmul.mubr.f32.gmra.mrb[2].mxu1 %v312_v6  ;;  %v1361_v0 = vpack.c.bf16 %v304_v63, %v303_v62  ;;  %v308_v6 = vld [vmem:[%s1964_s1 + $0x268] sm:$0xff] }
  0x35   : > { %1329 = vmatpush3.bf16.msra.mxu1 %v1328_v2  ;;  %1306 = vmatprep.subr.bf16.mxu0 %v1486_v3  ;;  %v306_v2 = vld [vmem:[%s1964_s1 + $0x258] sm:$0xff]  ;;  %v1367_v7 = vpack.c.bf16 %v308_v6, %v307_v5 }
  0x36   : > { %1330 = vmatprep.subr.bf16.mxu1 %v1486_v3  ;;  %1076 = vmatprep.mubr.msk.f32.mxu0 %vm1488_vm0, %v1487_v8  ;;  %v1364_v4 = vpack.c.bf16 %v306_v2, %v305_v1 }
  0x37   : > { %1077 = vmatmul.mubr.f32.gmra.mrb[4].mxu0 %v316_v11  ;;  %1117 = vmatprep.mubr.msk.f32.mxu1 %vm1488_vm0, %v1487_v8 }
  0x38   : > { %1308 = vmatpush3.bf16.msra.mxu0 %v1307_v10  ;;  %1118 = vmatmul.mubr.f32.gmra.mrb[4].mxu1 %v313_v15  ;;  %v310_v10 = vld [vmem:[%s1964_s1 + $0x278] sm:$0xff]  ;;  %v775_v15 = vld [vmem:[%s1966_s3] sm:$0xff] }
  0x39   : > { %1332 = vmatpush3.bf16.msra.mxu1 %v1331_v12  ;;  %1309 = vmatprep.subr.bf16.mxu0 %v1486_v3  ;;  %v1370_v11 = vpack.c.bf16 %v310_v10, %v309_v9  ;;  %v649_v12 = vld [vmem:[#allocation2 + $0x4] sm:$0xff] }
  0x3a   : > { %1333 = vmatprep.subr.bf16.mxu1 %v1486_v3  ;;  %1152 = vmatprep.mubr.msk.f32.mxu0 %vm1488_vm0, %v1487_v8 }
  0x3b   : > { %1193 = vmatprep.mubr.msk.f32.mxu1 %vm1488_vm0, %v1487_v8 }
  0x3c   : > { %1311 = vmatpush3.bf16.msra.mxu0 %v1310_v18 }
  0x3d   : > { %1335 = vmatpush3.bf16.msra.mxu1 %v1334_v19  ;;  %1312 = vmatprep.subr.bf16.mxu0 %v1486_v3 }
  0x3e   : > { %1336 = vmatprep.subr.bf16.mxu1 %v1486_v3 }
  0x40   : > { %1314 = vmatpush3.bf16.msra.mxu0 %v1313_v24 }
  0x41   : > { %1338 = vmatpush3.bf16.msra.mxu1 %v1337_v25  ;;  %1315 = vmatprep.subr.bf16.mxu0 %v1486_v3 }
  0x42   : > { %1339 = vmatprep.subr.bf16.mxu1 %v1486_v3 }
  0x44   : > { %1317 = vmatpush3.bf16.msra.mxu0 %v1316_v30 }
  0x45   : > { %1341 = vmatpush3.bf16.msra.mxu1 %v1340_v31  ;;  %1318 = vmatprep.subr.bf16.mxu0 %v1486_v3 }
  0x46   : > { %1342 = vmatprep.subr.bf16.mxu1 %v1486_v3 }
  0x48   : > { %1320 = vmatpush3.bf16.msra.mxu0 %v1319_v36 }
  0x49   : > { %1344 = vmatpush3.bf16.msra.mxu1 %v1343_v37  ;;  %1321 = vmatprep.subr.bf16.mxu0 %v1486_v3 }
  0x4a   : > { %1345 = vmatprep.subr.bf16.mxu1 %v1486_v3 }
  0x4c   : > { %1323 = vmatpush3.bf16.msra.mxu0 %v1322_v42 }
  0x4d   : > { %1347 = vmatpush3.bf16.msra.mxu1 %v1346_v43  ;;  %1348 = vmatprep.subr.bf16.mxu0 %v1486_v3 }
  0x4e   : > { %1372 = vmatprep.subr.bf16.mxu1 %v1486_v3 }
  0x4f   : > { %1153 = vmatmul.mubr.f32.vlgmr.msra.gmra.mrb[6].mxu0 %v477_v46 }
  0x50   : > { %1350 = vmatpush3.bf16.msra.mxu0 %v1349_v47  ;;  %1194 = vmatmul.mubr.f32.vlgmr.msra.gmra.mrb[6].mxu1 %v563_v48 }
  0x51   : > { %1155 = vmatprep.mubr.msk.f32.mxu0 %vm1488_vm0, %v1487_v8  ;;  %1351 = vmatprep.subr.bf16.mxu0 %v1486_v3 }
  0x52   : > { %1196 = vmatprep.mubr.msk.f32.mxu1 %vm1488_vm0, %v1487_v8 }
  0x53   : > { %1156 = vmatmul.mubr.f32.gmra.mrb[8].mxu0 %v478_v51 }
  0x54   : > { %1353 = vmatpush3.bf16.msra.mxu0 %v1352_v52  ;;  %1197 = vmatmul.mubr.f32.gmra.mrb[8].mxu1 %v564_v53  ;;  %v933_v52 = vld [vmem:[%s1965_s2] ss:$0 sm:$0xff]  ;;  %v1489_v53 = vmov 17  }
  0x55   : > { %1158 = vmatprep.mubr.msk.f32.mxu0 %vm1488_vm0, %v1487_v8  ;;  %1354 = vmatprep.subr.bf16.mxu0 %v1486_v3  ;;  %v749_v54 = vsel %vm748_vm2, 16, %v1489_v53 }
  0x56   : > { %1199 = vmatprep.mubr.msk.f32.mxu1 %vm1488_vm0, %v1487_v8  ;;  %v751_v59 = vsel %vm750_vm3, %v749_v54, 18 }
  0x57   : > { %1159 = vmatmul.mubr.f32.gmra.mrb[10].mxu0 %v479_v56 }
  0x58   : > { %1356 = vmatpush3.bf16.msra.mxu0 %v1355_v57  ;;  %1200 = vmatmul.mubr.f32.gmra.mrb[10].mxu1 %v565_v58  ;;  %v753_v57 = vshrl.u32 %v752_v50, 7 }
  0x59   : > { %1357 = vmatprep.subr.bf16.mxu0 %v1486_v3  ;;  %1234 = vmatprep.mubr.msk.f32.mxu0 %vm1488_vm0, %v1487_v8 }
  0x5a   : > { %1249 = vmatprep.mubr.msk.f32.mxu1 %vm1488_vm0, %v1487_v8  ;;  %vm756_vm4 = vcmp.lt.s32.totalorder %v753_v57, %v751_v59 }
  0x5c   : > { %1359 = vmatpush3.bf16.msra.mxu0 %v1358_v61  ;;  %v754_v61 = vadd.s32 8, %v753_v57 }
  0x5d   : > { %1360 = vmatprep.subr.bf16.mxu0 %v1486_v3 }
  0x5e   : > { %vm757_vm5 = vcmp.lt.s32.totalorder %v754_v61, %v751_v59 }
  0x60   : > { %1362 = vmatpush3.bf16.msra.mxu0 %v1361_v0 }
  0x61   : > { %1363 = vmatprep.subr.bf16.mxu0 %v1486_v3 }
  0x64   : > { %1365 = vmatpush3.bf16.msra.mxu0 %v1364_v4  ;;  %v755_v4 = vadd.s32 16, %v753_v57 }
  0x65   : > { %1366 = vmatprep.subr.bf16.mxu0 %v1486_v3 }
  0x66   : > { %vm758_vm7 = vcmp.lt.s32.totalorder %v755_v4, %v751_v59 }
  0x68   : > { %1368 = vmatpush3.bf16.msra.mxu0 %v1367_v7 }
  0x69   : > { %1369 = vmatprep.subr.bf16.mxu0 %v1486_v3  ;;  %v776_v3 = vld [vmem:[%s1966_s3 + $0x8] sm:$0xff] }
  0x6a   : > { %v1373_v16 = vpack.c.bf16 %v776_v3, %v775_v15 }
  0x6c   : > { %1371 = vmatpush3.bf16.msra.mxu0 %v1370_v11  ;;  %1374 = vmatpush3.bf16.msra.mxu1 %v1373_v16 }
  0x6d   : > { %1247 = vmatprep.subr.mxu1 %v1487_v8 }
  0x6f   : > { %1235 = vmatmul.mubr.f32.vlgmr.msra.gmra.mrb[12].mxu0 %v649_v12 }
  0x70   : > { %1237 = vmatprep.mubr.msk.f32.mxu0 %vm1488_vm0, %v1487_v8  ;;  %1248 = vmatpush3.msra.mxu1 %v777_v17 }
  0x73   : > { %1238 = vmatmul.mubr.f32.gmra.mrb[14].mxu0 %v650_v13 }
  0x74   : > { %1240 = vmatprep.mubr.msk.f32.mxu0 %vm1488_vm0, %v1487_v8 }
  0x77   : > { %1241 = vmatmul.mubr.f32.gmra.mrb[16].mxu0 %v651_v14 }
 0x102   : > { %v383_v18 = vpop.f32.mrb[0].mxu0 }
 0x103   : > { %v1072_v19 = vpop.f32.mrb[1].mxu0  ;;  %v463_v20 = vpop.f32.mrb[0].mxu1 }
 0x104   : > { %v464_v21 = vadd.f32 %v463_v20, %v383_v18  ;;  %v1113_v22 = vpop.f32.mrb[1].mxu1 }
 0x106   : > { %v388_v23 = vpop.f32.mrb[2].mxu0 }
 0x107   : > { %v1075_v24 = vpop.f32.mrb[3].mxu0  ;;  %v468_v25 = vpop.f32.mrb[2].mxu1 }
 0x108   : > { %v469_v26 = vadd.f32 %v468_v25, %v388_v23  ;;  %v1116_v27 = vpop.f32.mrb[3].mxu1  ;;  %v778_v24 = vld [vmem:[%s1967_s4] sm:$0x1] }
 0x10a   : > { %v393_v28 = vpop.f32.mrb[4].mxu0 }
 0x10b   : > { %v1078_v29 = vpop.f32.mrb[5].mxu0  ;;  %v473_v30 = vpop.f32.mrb[4].mxu1 }
 0x10c   : > { %v474_v31 = vadd.f32 %v473_v30, %v393_v28  ;;  %v1119_v8 = vpop.f32.mrb[5].mxu1 }
 0x122   : > { %v546_v32 = vpop.f32.mrb[6].mxu0 }
 0x123   : > { %v560_v33 = vadd.f32 %v546_v32, %v464_v21  ;;  %v1154_v34 = vpop.f32.mrb[7].mxu0  ;;  %v632_v35 = vpop.f32.mrb[6].mxu1 }
 0x124   : > { %v1195_v36 = vpop.f32.mrb[7].mxu1 }
 0x125   : > { %v646_v37 = vadd.f32 %v632_v35, %v560_v33 }
 0x126   : > { %v551_v38 = vpop.f32.mrb[8].mxu0 }
 0x127   : > { %v561_v39 = vadd.f32 %v551_v38, %v469_v26  ;;  %v637_v40 = vpop.f32.mrb[8].mxu1  ;;  %v1157_v41 = vpop.f32.mrb[9].mxu0 }
 0x128   : > { %v1198_v42 = vpop.f32.mrb[9].mxu1 }
 0x129   : > { %v647_v43 = vadd.f32 %v637_v40, %v561_v39 }
 0x12a   : > { %v556_v44 = vpop.f32.mrb[10].mxu0 }
 0x12b   : > { %v562_v45 = vadd.f32 %v556_v44, %v474_v31  ;;  %v642_v46 = vpop.f32.mrb[10].mxu1  ;;  %v1160_v47 = vpop.f32.mrb[11].mxu0 }
 0x12c   : > { %v1201_v48 = vpop.f32.mrb[11].mxu1 }
 0x12d   : > { %v648_v49 = vadd.f32 %v642_v46, %v562_v45 }
 0x142   : > { %v718_v51 = vpop.f32.mrb[12].mxu0 }
 0x143   : > { %v732_v55 = vadd.f32 %v718_v51, %v646_v37  ;;  %v1236_v56 = vpop.f32.mrb[13].mxu0 }
 0x145   : > { %v742_v58 = vadd.f32 %v933_v52, %v732_v55 }
 0x146   : > { %v723_v60 = vpop.f32.mrb[14].mxu0 }
 0x147   : > { %v745_v62 = vmax.f32 %v742_v58, 0.0  ;;  %v733_v63 = vadd.f32 %v723_v60, %v647_v43  ;;  %v1239_v0 = vpop.f32.mrb[15].mxu0 }
 0x149   : > { %v743_v1 = vadd.f32 %v933_v52, %v733_v63  ;;  %v759_v5 = vsel %vm756_vm4, %v745_v62, 0.0 }
 0x14a   : > { %v728_v2 = vpop.f32.mrb[16].mxu0  ;;  %v763_v12 = vsel %vm762_vm6, %v759_v5, -inf }
 0x14b   : > { %v746_v6 = vmax.f32 %v743_v1, 0.0  ;;  %v734_v7 = vadd.f32 %v728_v2, %v648_v49  ;;  %v1242_v9 = vpop.f32.mrb[17].mxu0 }
 0x14d   : > { %v760_v10 = vsel %vm757_vm5, %v746_v6, 0.0  ;;  %v744_v11 = vadd.f32 %v933_v52, %v734_v7 }
 0x14e   : > { %v764_v13 = vsel %vm762_vm6, %v760_v10, -inf }
 0x14f   : > { %v767_v14 = vmax.f32 %v763_v12, %v764_v13  ;;  %v747_v15 = vmax.f32 %v744_v11, 0.0 }
 0x151   : > { %v761_v3 = vsel %vm758_vm7, %v747_v15, 0.0 }
 0x152   : > { %v766_v16 = vsel %vm765_vm8, %v761_v3, -inf }
 0x153   : > { %v768_v17 = vmax.f32 %v767_v14, %v766_v16 }
 0x155   : > { %v769_v18 = vrot.slane %v768_v17, 4 }
 0x157   : > { %v770_v19 = vmax.f32 %v768_v17, %v769_v18 }
 0x159   : > { %v771_v20 = vrot.slane %v770_v19, 2 }
 0x15b   : > { %v772_v21 = vmax.f32 %v770_v19, %v771_v20 }
 0x15d   : > { %v773_v22 = vrot.slane %v772_v21, 1 }
 0x15f   : > { %v774_v23 = vmax.f32 %v772_v21, %v773_v22 }
 0x161   : > { %1250 = vmatmul.mubr.msk.f32.vlgmr.msra.gmra.mrb[12].mxu1 %vm762_vm6, %v774_v23 }
 0x234   : > { %v848_v25 = vpop.f32.mrb[12].mxu1 }
 0x235   : > { %v849_v26 = vadd.f32 %v848_v25, %v778_v24  ;;  %v1251_v27 = vpop.f32.mrb[13].mxu1 }
 0x237   : > { %v852_v28 = vsub.f32 0.0, %v849_v26 }
 0x239   : > { %v853_v29 = vmul.f32 1.442695, %v852_v28 }
 0x23b   : > { %1418 = vpow2.f32 %v853_v29 }
 0x245   : > { %v1419_v30 = vpop.eup %1418 }
 0x246   : > { %v855_v31 = vadd.f32 1.0, %v1419_v30 }
 0x248   : > { %1420 = vrcp.f32 %v855_v31 }
 0x252   : > { %v1421_v8 = vpop.eup %1420 }
 0x253   : > { %858 = vst [vmem:[%s216_s7] sm:$0x1] %v1421_v8 }
 0x254   : > { %1435 = shalt.err (!%p1432_p3)
}
 0x255   : > { %s1436_s16 = scalar_lea.hbm %s1921_s11, 16  ;;  %s1440_s25 = scalar_lea.hbm %s1968_s5, 32 }
 0x256   : > { %p1437_p4 = scmp.ne.s32.totalorder %s1921_s11, %s1436_s16  ;;  %p1441_p9 = scmp.lt.u32.totalorder %s1921_s11, %s1968_s5 }
 0x257   : > { %p1442_p10 = scmp.lt.u32.totalorder %s1440_s25, %s1436_s16  ;;  %p1444_p12 = scmp.lt.u32.totalorder %s1436_s16, %s1921_s11 }
 0x258   : > { %p1438_p7 = pnand %p1437_p4, %p1559_p5 }
 0x259   : > { %p1443_p11 = por %p1442_p10, %p1441_p9 }
 0x25a   : > { %p1439_p8 = pneg %p1438_p7 }
 0x25b   : > { %p1445_p13 = por %p1444_p12, %p1443_p11 }
 0x25d   : > { %p1446_p0 = pnand %p1445_p13, %p1439_p8 }
 0x25f   : > { %1449 = shalt.err (!%p1446_p0)
}
 0x260   : > { %1375 = dma.vmem_to_hbm [thread:$0]  (%p1559_p5), %s1923_s8, 16, %s1921_s11, %s860_s12  }
 0x261 PF: > { %p1381_p1 = scmp.ge.s32.totalorder %s1484_s21, 2  ;;  %s884_s30 = sand.u32 1, %s1472_s18  }
 0x262   : > { %s885_s7 = scalar_lea.sflag [#allocation4], %s884_s30 }
 0x263   : > { %p1378_p2 = pnand %p1381_p1, %p1563_p6 }
 0x265   : > { %1467 = dma.done.wait (!%p1378_p2), %s885_s7, 16  }
 0x266   : > { %1469 = vsyncadd (!%p1378_p2), %s885_s7, 4294967280  ;;  %p15_p3 = scmp.ge.s32.totalorder %s1546_s24, 4   ;;  %s1971_s18 = smov %s1476_s19 }
 0x267   : > { %s1972_s19 = smov %s1480_s20  ;;  %s1973_s20 = smov %s1557_s27 }
 0x268   : > { %s1974_s21 = smov %s1546_s24  ;;  %17 = sbr.rel (!%p15_p3) target bundleno = 3 (0x3), region = 75 }
 0x26f   :  { %889 = vsyncpa [#allocation4], 1 }
 0x270   :  { %891 = vsyncpa [#allocation4 + $0x1], 1 }

</bundles_post_ra>
